<compile_context>
chip_gen: v7x
topology: tpu7x:2x2x1
jax: 0.10.0
libtpu: 0.0.40
codegen_flags: <defaults>
</compile_context>

<pallas_src>
import jax
import jax.numpy as jnp
from jax.experimental import pallas as pl
from jax.experimental.pallas import tpu as pltpu


def stepper_kernel(xT_ref, w1T_ref, b1_ref, w2sT_ref, b2s_ref, eps_ref, yT_ref):
    """Fused: MLP (with S folded into the 2nd Linear) -> residual -> PReLU.

    Feature-major layout: batch is the lane (last) axis.

    xT_ref   : (n_species, TB)       input tile, transposed
    w1T_ref  : (hidden, n_species)   W1^T            b1_ref  : (hidden, 1)
    w2sT_ref : (n_species, hidden)   (W2 @ S^T)^T    b2s_ref : (n_species, 1)
    eps_ref  : (n_species, 1)        per-species PReLU weight
    yT_ref   : (n_species, TB)       output tile, transposed
    """
    xT = xT_ref[...]

    # h^T = relu(W1^T @ x^T + b1)
    # (K = n_species = 4 is tiny; with N = TB lane-wide the padded vmatmul is
    #  cheap — could be unrolled as 4 VPU broadcast-FMAs if profiling says so.)
    hT = jnp.dot(w1T_ref[...], xT, preferred_element_type=jnp.float32) + b1_ref[...]
    hT = jnp.maximum(hT, 0.0)

    # y^T = x^T + (W2 S)^T @ h^T + (b2 S)^T     (learn_rates branch, S folded)
    yT = xT + jnp.dot(w2sT_ref[...], hT, preferred_element_type=jnp.float32) + b2s_ref[...]

    # rectify_outputs: F.prelu(y, epsilon) with per-species epsilon,
    # broadcast over the batch/lane axis.
    eps = eps_ref[...]
    yT_ref[...] = jnp.where(yT >= 0.0, yT, eps * yT)


def chemical_time_stepper(x, w1, b1, w2, b2, smatrix_raw, epsilon, *, tb=None):
    """ChemicalTimeStepper forward.

    x           : (B, n_species)
    w1          : (n_species, hidden)   -- Linear 1 weight, stored transposed
    b1          : (hidden,)
    w2          : (hidden, n_processes) -- Linear 2 weight, stored transposed
    b2          : (n_processes,)
    smatrix_raw : (n_species, n_processes) as loaded by parameters_loader;
                  transposed here exactly like the module's __init__.
    epsilon     : (n_species,)
    tb          : batch tile (lane width). Must divide B and be a multiple of
                  128 or equal to B. Sweep 512-2048 for large production B.
    """
    B, n_species = x.shape
    hidden = w1.shape[1]
    n_processes = w2.shape[1]

    if tb is None:
        tb = B if (B <= 2048 or B % 2048 != 0) else 2048
    assert B % tb == 0, "batch must be divisible by the batch tile"
    assert tb == B or tb % 128 == 0, "lane tile must be 128-multiple or full B"

    # Module __init__ transpose, then fold S into the second Linear.
    s_t = jnp.transpose(smatrix_raw)                # (n_processes, n_species)
    w2s = w2 @ s_t                                  # (hidden, n_species)
    b2s = b2 @ s_t                                  # (n_species,)

    # Feature-major operands.
    xT = jnp.transpose(x)                           # (n_species, B)
    w1T = jnp.transpose(w1)                         # (hidden, n_species)
    w2sT = jnp.transpose(w2s)                       # (n_species, hidden)
    b1_col = b1.reshape(hidden, 1)
    b2s_col = b2s.reshape(n_species, 1)
    eps_col = epsilon.reshape(n_species, 1)

    grid = (B // tb,)

    yT = pl.pallas_call(
        stepper_kernel,
        out_shape=jax.ShapeDtypeStruct((n_species, B), jnp.float32),
        grid_spec=pltpu.PrefetchScalarGridSpec(
            num_scalar_prefetch=0,
            grid=grid,
            in_specs=[
                pl.BlockSpec((n_species, tb), lambda i: (0, i)),       # x^T tile
                pl.BlockSpec((hidden, n_species), lambda i: (0, 0)),   # W1^T (const)
                pl.BlockSpec((hidden, 1), lambda i: (0, 0)),           # b1
                pl.BlockSpec((n_species, hidden), lambda i: (0, 0)),   # (W2 S)^T (const)
                pl.BlockSpec((n_species, 1), lambda i: (0, 0)),        # b2 S
                pl.BlockSpec((n_species, 1), lambda i: (0, 0)),        # epsilon
            ],
            out_specs=pl.BlockSpec((n_species, tb), lambda i: (0, i)),
        ),
        compiler_params=pltpu.CompilerParams(
            dimension_semantics=("parallel",),
        ),
    )(xT, w1T, b1_col, w2sT, b2s_col, eps_col)

    return jnp.transpose(yT)                        # back to (B, n_species)


def reference(x, w1, b1, w2, b2, smatrix_raw, epsilon):
    """Pure-JAX reference mirroring the PyTorch forward (no S-fold)."""
    h = jnp.maximum(x @ w1 + b1, 0.0)
    rates = h @ w2 + b2
    y = x + rates @ jnp.transpose(smatrix_raw)
    return jnp.where(y >= 0.0, y, epsilon[None, :] * y)


if __name__ == "__main__":
    # Deterministic setup consistent with the module:
    #   n_species = net.in_features, n_processes = net.out_features.
    # B=512 with tb=256 -> 2 parallel grid steps, lane width multiple of 256.
    B, n_species, hidden, n_processes = 512, 4, 32, 6

    key = jax.random.PRNGKey(0)
    kx, kw1, kb1, kw2, kb2, ks, ke = jax.random.split(key, 7)

    x = jax.random.uniform(kx, (B, n_species), jnp.float32)
    w1 = 0.1 * jax.random.normal(kw1, (n_species, hidden), jnp.float32)
    b1 = 0.1 * jax.random.normal(kb1, (hidden,), jnp.float32)
    w2 = 0.1 * jax.random.normal(kw2, (hidden, n_processes), jnp.float32)
    b2 = 0.1 * jax.random.normal(kb2, (n_processes,), jnp.float32)
    # Smatrix as stored by the parameters_loader: (n_species, n_processes);
    # the wrapper transposes it exactly like the module's __init__ does.
    smatrix_raw = jax.random.normal(ks, (n_species, n_processes), jnp.float32)
    epsilon = 0.25 * jnp.abs(jax.random.normal(ke, (n_species,), jnp.float32))

    y = chemical_time_stepper(x, w1, b1, w2, b2, smatrix_raw, epsilon, tb=256)
    y = jax.block_until_ready(y)

    y_ref = reference(x, w1, b1, w2, b2, smatrix_raw, epsilon)
    assert y.shape == (B, n_species)
    # S-fold re-associates the f32 sum over n_processes; differences are ~1e-7,
    # well within tolerance.
    assert jnp.allclose(y, y_ref, atol=1e-5, rtol=1e-5), "mismatch vs reference"

    # TODO(synk): apply_QP_correction / QPL branch calls exit() in the original
    # module and depends on an external QP layer; not implemented.
    print("KERNEL_OK")
</pallas_src>

<mosaic_0001>
module attributes {stable_mosaic.version = 11 : i64} {
  func.func @stepper_kernel(%arg0: i32, %arg1: memref<4x256xf32, #tpu.memory_space<vmem>>, %arg2: memref<32x4xf32, #tpu.memory_space<vmem>>, %arg3: memref<32x1xf32, #tpu.memory_space<vmem>>, %arg4: memref<4x32xf32, #tpu.memory_space<vmem>>, %arg5: memref<4x1xf32, #tpu.memory_space<vmem>>, %arg6: memref<4x1xf32, #tpu.memory_space<vmem>>, %arg7: memref<4x256xf32, #tpu.memory_space<vmem>>) attributes {dimension_semantics = [#tpu.dimension_semantics<parallel>], iteration_bounds = array<i64: 2>, scalar_prefetch = 0 : i64, scratch_operands = 0 : i64, tpu.core_type = #tpu.core_type<tc>, window_params = [{transform_indices = @transform_0, window_bounds = array<i64: 4, 256>}, {pipeline_mode = #tpu.pipeline_mode<synchronous>, transform_indices = @transform_1, window_bounds = array<i64: 32, 4>}, {pipeline_mode = #tpu.pipeline_mode<synchronous>, transform_indices = @transform_2, window_bounds = array<i64: 32, 1>}, {pipeline_mode = #tpu.pipeline_mode<synchronous>, transform_indices = @transform_3, window_bounds = array<i64: 4, 32>}, {pipeline_mode = #tpu.pipeline_mode<synchronous>, transform_indices = @transform_4, window_bounds = array<i64: 4, 1>}, {pipeline_mode = #tpu.pipeline_mode<synchronous>, transform_indices = @transform_5, window_bounds = array<i64: 4, 1>}, {transform_indices = @transform_6, window_bounds = array<i64: 4, 256>}]} {
    %c0 = arith.constant 0 : index
    %c0_0 = arith.constant 0 : index
    %0 = vector.load %arg1[%c0, %c0_0] : memref<4x256xf32, #tpu.memory_space<vmem>>, vector<4x256xf32>
    %c0_1 = arith.constant 0 : index
    %c0_2 = arith.constant 0 : index
    %1 = vector.load %arg2[%c0_1, %c0_2] : memref<32x4xf32, #tpu.memory_space<vmem>>, vector<32x4xf32>
    %cst = arith.constant dense<0.000000e+00> : vector<32x256xf32>
    %2 = tpu.matmul %1, %0, %cst {dimension_numbers = #tpu.dot_dimension_numbers<[1], [0], [0], [1], [0, 0, 1, 1], [], []>} : vector<32x4xf32>, vector<4x256xf32>, vector<32x256xf32> -> vector<32x256xf32>
    %c0_3 = arith.constant 0 : index
    %c0_4 = arith.constant 0 : index
    %3 = vector.load %arg3[%c0_3, %c0_4] : memref<32x1xf32, #tpu.memory_space<vmem>>, vector<32x1xf32>
    %4 = vector.broadcast %3 : vector<32x1xf32> to vector<32x256xf32>
    %5 = arith.addf %2, %4 : vector<32x256xf32>
    %cst_5 = arith.constant 0.000000e+00 : f32
    %6 = vector.broadcast %cst_5 : f32 to vector<32x256xf32>
    %7 = arith.maximumf %5, %6 : vector<32x256xf32>
    %c0_6 = arith.constant 0 : index
    %c0_7 = arith.constant 0 : index
    %8 = vector.load %arg4[%c0_6, %c0_7] : memref<4x32xf32, #tpu.memory_space<vmem>>, vector<4x32xf32>
    %cst_8 = arith.constant dense<0.000000e+00> : vector<4x256xf32>
    %9 = tpu.matmul %8, %7, %cst_8 {dimension_numbers = #tpu.dot_dimension_numbers<[1], [0], [0], [1], [0, 0, 1, 1], [], []>} : vector<4x32xf32>, vector<32x256xf32>, vector<4x256xf32> -> vector<4x256xf32>
    %10 = arith.addf %0, %9 : vector<4x256xf32>
    %c0_9 = arith.constant 0 : index
    %c0_10 = arith.constant 0 : index
    %11 = vector.load %arg5[%c0_9, %c0_10] : memref<4x1xf32, #tpu.memory_space<vmem>>, vector<4x1xf32>
    %12 = vector.broadcast %11 : vector<4x1xf32> to vector<4x256xf32>
    %13 = arith.addf %10, %12 : vector<4x256xf32>
    %c0_11 = arith.constant 0 : index
    %c0_12 = arith.constant 0 : index
    %14 = vector.load %arg6[%c0_11, %c0_12] : memref<4x1xf32, #tpu.memory_space<vmem>>, vector<4x1xf32>
    %cst_13 = arith.constant 0.000000e+00 : f32
    %15 = vector.broadcast %cst_13 : f32 to vector<4x256xf32>
    %16 = arith.cmpf oge, %13, %15 : vector<4x256xf32>
    %17 = vector.broadcast %14 : vector<4x1xf32> to vector<4x256xf32>
    %18 = arith.mulf %17, %13 : vector<4x256xf32>
    %19 = arith.select %16, %13, %18 : vector<4x256xi1>, vector<4x256xf32>
    %c0_14 = arith.constant 0 : index
    %c0_15 = arith.constant 0 : index
    %20 = vector.load %arg7[%c0_14, %c0_15] : memref<4x256xf32, #tpu.memory_space<vmem>>, vector<4x256xf32>
    tpu.vector_store %arg7[%c0_14, %c0_15], %19 {strides = array<i32>} : memref<4x256xf32, #tpu.memory_space<vmem>>, vector<4x256xf32>,
    return
  }
  func.func @transform_0(%arg0: i32) -> (i32, i32) {
    %c0_i32 = arith.constant 0 : i32
    %c0_i32_0 = arith.constant 0 : i32
    return %c0_i32, %arg0 : i32, i32
  }
  func.func @transform_1(%arg0: i32) -> (i32, i32) {
    %c0_i32 = arith.constant 0 : i32
    %c0_i32_0 = arith.constant 0 : i32
    %c0_i32_1 = arith.constant 0 : i32
    return %c0_i32, %c0_i32_0 : i32, i32
  }
  func.func @transform_2(%arg0: i32) -> (i32, i32) {
    %c0_i32 = arith.constant 0 : i32
    %c0_i32_0 = arith.constant 0 : i32
    %c0_i32_1 = arith.constant 0 : i32
    return %c0_i32, %c0_i32_0 : i32, i32
  }
  func.func @transform_3(%arg0: i32) -> (i32, i32) {
    %c0_i32 = arith.constant 0 : i32
    %c0_i32_0 = arith.constant 0 : i32
    %c0_i32_1 = arith.constant 0 : i32
    return %c0_i32, %c0_i32_0 : i32, i32
  }
  func.func @transform_4(%arg0: i32) -> (i32, i32) {
    %c0_i32 = arith.constant 0 : i32
    %c0_i32_0 = arith.constant 0 : i32
    %c0_i32_1 = arith.constant 0 : i32
    return %c0_i32, %c0_i32_0 : i32, i32
  }
  func.func @transform_5(%arg0: i32) -> (i32, i32) {
    %c0_i32 = arith.constant 0 : i32
    %c0_i32_0 = arith.constant 0 : i32
    %c0_i32_1 = arith.constant 0 : i32
    return %c0_i32, %c0_i32_0 : i32, i32
  }
  func.func @transform_6(%arg0: i32) -> (i32, i32) {
    %c0_i32 = arith.constant 0 : i32
    %c0_i32_0 = arith.constant 0 : i32
    return %c0_i32, %arg0 : i32, i32
  }
}

</mosaic_0001>

<bundles_post_ra>
// kernel: tpu_custom_call.1
= control target key start
LH: loop header
LB: loop body
LE: loop exit
PB: predicated region body
PF: predicated region fallthrough
CT: control target
= control target key end

     0   :  { %11 = vsyncpa [#allocation3], 0  ;;  %s900_s0 = inlined_call_operand.vmem [shape: f32[4,512], index: 0, kind: input, shape index: {}]   ;;  %s901_s1 = inlined_call_operand.vmem [shape: f32[32,4], index: 1, kind: input, shape index: {}]   ;;  %s902_s2 = inlined_call_operand.vmem [shape: f32[32,1], index: 2, kind: input, shape index: {}]   ;;  %s903_s3 = inlined_call_operand.vmem [shape: f32[4,32], index: 3, kind: input, shape index: {}]   ;;  %s904_s4 = inlined_call_operand.vmem [shape: f32[4,1], index: 4, kind: input, shape index: {}]   ;;  %s905_s5 = inlined_call_operand.vmem [shape: f32[4,1], index: 5, kind: input, shape index: {}]   ;;  %s906_s6 = inlined_call_operand.hbm [shape: f32[4,512], index: 6, kind: output, shape index: {}]  }
   0x1   :  { %13 = vsyncpa [#allocation3 + $0x1], 0  ;;  %s762_s21 = smov 0   ;;  %s764_s22 = smov 0  }
   0x2   :  { %s766_s23 = smov 0   ;;  %s768_s24 = smov 0  }
   0x3 LB: > { %s783_s25 = sadd.s32 4294967295, %s721_s24   ;;  %s586_s26 = sadd.s32 4294967294, %s721_s24   ;;  %s721_s24 = sphi %s768_s24, %s912_s24   ;;  %s717_s23 = sphi %s766_s23, %s911_s23   ;;  %s713_s22 = sphi %s764_s22, %s910_s22   ;;  %s709_s21 = sphi %s762_s21, %s909_s21  }
   0x4   : > { %s787_s27 = sadd.s32 1, %s721_s24   ;;  %s157_s28 = sadd.s32 1, %s717_s23 }
   0x5   : > { %s154_s29 = ssub.s32 %s721_s24, %s787_s27  ;;  %p167_p0 = scmp.ne.s32.totalorder %s717_s23, %s713_s22 }
   0x6   : > { %p155_p1 = scmp.eq.s32.totalorder %s154_s29, 0  ;;  %p168_p2 = scmp.eq.s32.totalorder %s783_s25, 1 }
   0x7   : > { %p173_p3 = scmp.ne.s32.totalorder %s713_s22, %s709_s21  ;;  %p174_p4 = scmp.eq.s32.totalorder %s586_s26, 1 }
   0x8   : > { %s798_s30 = scalar_select %p155_p1, %s717_s23, %s157_s28  }
   0x9   : > { %p800_p5 = por %p168_p2, %p167_p0  ;;  %p804_p6 = por %p174_p4, %p173_p3 }
   0xa   : > { %p589_p7 = scmp.ge.s32.totalorder %s721_s24, 1  ;;  %p216_p8 = scmp.lt.s32.totalorder %s721_s24, 3 }
   0xc   : > { %p217_p9 = pnand %p589_p7, %p216_p8 }
   0xd   : > { %s591_s9 = sshll.u32 (!%p217_p9), %s783_s25, 1  ;;  %v723_v0 = vmov (!%p217_p9), 0.0   ;;  %v258_v1 = vld [vmem:[%s902_s2] sm:$0xff] (!%p217_p9)  ;;  %v724_v2 = vmov (!%p217_p9), 0   ;;  %v260_v3 = vld [vmem:[%s902_s2 + $0x10] sm:$0xff] (!%p217_p9)  ;;  %v259_v4 = vld [vmem:[%s902_s2 + $0x8] sm:$0xff] (!%p217_p9)  ;;  %v488_v49 = vlaneseq (!%p217_p9) }
   0xe   : > { %220 = sbr.rel (%p217_p9) target bundleno = 504 (0x1f8), region = 44  ;;  %p247_p10 = scmp.lt.s32.totalorder (!%p217_p9), %s591_s9, 3  ;;  %366 = vmatprep.mubr.f32.mxu0 (!%p217_p9), %v723_v0  ;;  %468 = vmatprep.mubr.f32.mxu1 (!%p217_p9), %v723_v0  ;;  %v261_v5 = vld [vmem:[%s902_s2 + $0x18] sm:$0xff] (!%p217_p9)  ;;  %vm297_vm0 = vcmask (!%p217_p9), 1043456   ;;  %v480_v8 = vld [vmem:[%s904_s4] sm:$0xf] (!%p217_p9) }
   0xf   : > { %656 = vset.pattern.permute.xlu0 (!%p217_p9), %v724_v2  ;;  %657 = vset.pattern.permute.xlu1 (!%p217_p9), %v724_v2  ;;  %v254_v9 = vld [vmem:[%s901_s1] sm:$0xff] (!%p217_p9)  ;;  %vm284_vm1 = vcmask (!%p217_p9), 31744   ;;  %v255_v11 = vld [vmem:[%s901_s1 + $0x8] sm:$0xff] (!%p217_p9)  ;;  %v256_v12 = vld [vmem:[%s901_s1 + $0x10] sm:$0xff] (!%p217_p9)  ;;  %vm400_vm2 = vcmask (!%p217_p9), 261120   ;;  %v489_v51 = vshrl.u32 (!%p217_p9), %v488_v49, 7 }
  0x10   : > { %264 = vperm.xlu0 (!%p217_p9), %656, %v258_v1   ;;  %274 = vperm.xlu1 (!%p217_p9), %657, %v260_v3   ;;  %v494_v10 = vld [vmem:[%s905_s5] sm:$0xf] (!%p217_p9)  ;;  %v257_v13 = vld [vmem:[%s901_s1 + $0x18] sm:$0xff] (!%p217_p9)  ;;  %v725_v47 = vmov (!%p217_p9), 839922192   ;;  %s605_s29 = sshll.u32 (!%p217_p9), %s783_s25, 7 }
  0x11   : > { %v399_v46 = vld [vmem:[%s903_s3] sm:$0xf] (!%p217_p9)  ;;  %v486_v48 = vunpack.c.l.s4 (!%p217_p9), %v725_v47  ;;  %s858_s13 = scalar_lea.hbm (!%p217_p9), %s906_s6, %s605_s29  ;;  %s726_s25 = smov (!%p217_p9), [#allocation2]  }
  0x12   : > { %s663_s16 = sshll.u32 (!%p217_p9), %s726_s25, 4  ;;  %s664_s16 = int_to_ptr.vmem [resolvable:$false] %s663_s16 }
  0x13   : > { %v487_v50 = vunpack.c.0.s8 (!%p217_p9), %v486_v48  ;;  %s665_s17 = scalar_lea.vmem (!%p217_p9), %s664_s16, 256 }
  0x14   : > { %269 = vperm.xlu0 (!%p217_p9), %656, %v259_v4   ;;  %279 = vperm.xlu1 (!%p217_p9), %657, %v261_v5  }
  0x15   : > { %s914_s9 = smov (!%p247_p10, %s591_s9), 3  ;;  %v490_v52 = vsub.s32 %v487_v50, %v489_v51 }
  0x16   : > { %s592_s18 = sshll.u32 %s914_s9, 2 }
  0x17   : > { %s250_s26 = scalar_lea.vmem %s900_s0, %s592_s18 }
  0x18   : > { %v826_v6 = vld [vmem:[%s250_s26] sm:$0xff]  ;;  %483 = vperm.xlu0 %656, %v480_v8   ;;  %498 = vperm.xlu1 %657, %v494_v10   ;;  %s243_s26 = sand.u32 1, %s713_s22  }
  0x19   : > { %v283_v7 = vcombine.high %v826_v6, %v826_v6  ;;  %s590_s28 = sshll.u32 %s243_s26, 3  ;;  %s513_s14 = scalar_lea.sflag [#allocation3], %s243_s26 }
  0x1a   : > { %s245_s10 = scalar_lea.vmem [#allocation2], %s590_s28 }
  0x1b   : > { %593 = vmatprep.subr.msk.mxu0 %vm297_vm0, %v283_v7  ;;  %s527_s11 = sshll.u32 %s245_s10, 4  ;;  %s860_s11 = int_to_ptr.vmem [resolvable:$true] %s527_s11 }
  0x1c   : > { %594 = vmatpush1.msk.msra.mxu0 %vm297_vm0, %v826_v6  ;;  %s659_s15 = scalar_lea.vmem %s860_s11, 128  ;;  %p666_p0 = scmp.lt.s32.totalorder %s860_s11, %s664_s16 }
  0x1d   : > { %595 = vmatmul.mubr.msk.f32.vlgmr.msra.gmra.mrb[0].mxu0 %vm284_vm1, %v254_v9  ;;  %p660_p11 = scmp.ne.s32.totalorder %s860_s11, %s659_s15  ;;  %p667_p1 = scmp.lt.s32.totalorder %s665_s17, %s659_s15 }
  0x1e   : > { %372 = vmatprep.mubr.f32.mxu0 %v723_v0 }
  0x1f   : > { %p661_p12 = pnand %p660_p11, %p800_p5  ;;  %p668_p2 = por %p667_p1, %p666_p0 }
  0x21   : > { %596 = vmatmul.mubr.msk.f32.gmra.mrb[2].mxu0 %vm284_vm1, %v255_v11  ;;  %p662_p13 = pneg %p661_p12 }
  0x22   : > { %378 = vmatprep.mubr.f32.mxu0 %v723_v0 }
  0x23   : > { %p669_p3 = pnand %p668_p2, %p662_p13 }
  0x25   : > { %597 = vmatmul.mubr.msk.f32.gmra.mrb[4].mxu0 %vm284_vm1, %v256_v12 }
  0x26   : > { %384 = vmatprep.mubr.f32.mxu0 %v723_v0 }
  0x29   : > { %598 = vmatmul.mubr.msk.f32.gmra.mrb[6].mxu0 %vm284_vm1, %v257_v13 }
  0x8f   : > { %v265_v14 = vpop.permute.xlu0 %264  ;;  %v275_v23 = vpop.permute.xlu1 %274 }
  0x93   : > { %v270_v18 = vpop.permute.xlu0 %269  ;;  %v280_v34 = vpop.permute.xlu1 %279 }
  0x97   : > { %v484_v54 = vpop.permute.xlu0 %483  ;;  %v499_v61 = vpop.permute.xlu1 %498 }
  0x98   : > { %v491_v57 = vrot.slane %v484_v54, %v490_v52 }
  0xf0   : > { %v368_v15 = vpop.f32.mrb[0].mxu0 }
  0xf1   : > { %v370_v16 = vpop.f32.mrb[1].mxu0  ;;  %v369_v17 = vadd.f32 %v368_v15, %v265_v14 }
  0xf2   : > { %v371_v19 = vadd.f32 %v370_v16, %v265_v14 }
  0xf3   : > { %v391_v25 = vmax.f32 %v369_v17, 0.0 }
  0xf4   : > { %v374_v20 = vpop.f32.mrb[2].mxu0  ;;  %v392_v27 = vmax.f32 %v371_v19, 0.0 }
  0xf5   : > { %v375_v21 = vadd.f32 %v374_v20, %v270_v18  ;;  %v376_v22 = vpop.f32.mrb[3].mxu0 }
  0xf6   : > { %v377_v24 = vadd.f32 %v376_v22, %v270_v18 }
  0xf7   : > { %v393_v26 = vmax.f32 %v375_v21, 0.0 }
  0xf8   : > { %v394_v28 = vmax.f32 %v377_v24, 0.0  ;;  %v380_v29 = vpop.f32.mrb[4].mxu0 }
  0xf9   : > { %v382_v30 = vpop.f32.mrb[5].mxu0  ;;  %v608_v31 = vpack.c.bf16 %v393_v26, %v391_v25  ;;  %v381_v33 = vadd.f32 %v380_v29, %v275_v23 }
  0xfa   : > { %v606_v32 = vpack.c.bf16 %v394_v28, %v392_v27  ;;  %v383_v35 = vadd.f32 %v382_v30, %v275_v23 }
  0xfb   : > { %v395_v40 = vmax.f32 %v381_v33, 0.0 }
  0xfc   : > { %v386_v36 = vpop.f32.mrb[6].mxu0  ;;  %607 = vmatprep.subr.bf16.mxu1 %v606_v32  ;;  %v396_v42 = vmax.f32 %v383_v35, 0.0 }
  0xfd   : > { %v387_v37 = vadd.f32 %v386_v36, %v280_v34  ;;  %v388_v38 = vpop.f32.mrb[7].mxu0  ;;  %609 = vmatpush1.bf16.msra.mxu1 %v608_v31 }
  0xfe   : > { %v389_v39 = vadd.f32 %v388_v38, %v280_v34 }
  0xff   : > { %v397_v41 = vmax.f32 %v387_v37, 0.0 }
 0x100   : > { %v398_v43 = vmax.f32 %v389_v39, 0.0 }
 0x101   : > { %v612_v44 = vpack.c.bf16 %v397_v41, %v395_v40 }
 0x102   : > { %v610_v45 = vpack.c.bf16 %v398_v43, %v396_v42 }
 0x104   : > { %611 = vmatprep.subr.bf16.mxu1 %v610_v45 }
 0x105   : > { %613 = vmatpush1.bf16.msra.mxu1 %v612_v44 }
 0x108   : > { %599 = vmatmul.mubr.msk.f32.vlgmr.msra.gmra.mrb[0].mxu1 %vm400_vm2, %v399_v46 }
 0x1db   : > { %v470_v53 = vpop.f32.mrb[0].mxu1 }
 0x1dc   : > { %v472_v55 = vpop.f32.mrb[1].mxu1 }
 0x1dd   : > { %v477_v56 = vcombine.low %v470_v53, %v472_v55 }
 0x1df   : > { %v479_v58 = vadd.f32 %v477_v56, %v826_v6 }
 0x1e1   : > { %v493_v59 = vadd.f32 %v491_v57, %v479_v58 }
 0x1e3   : > { %v502_v60 = vcombine.high %v493_v59, %v493_v59  ;;  %v504_v62 = vmul.f32 %v499_v61, %v493_v59  ;;  %vm495_vm3 = vcmp.ge.f32.partialorder %v493_v59, 0.0 }
 0x1e5   : > { %v505_v63 = vmul.f32 %v502_v60, %v499_v61 }
 0x1e7   : > { %v508_v0 = vcombine.low %v504_v62, %v505_v63 }
 0x1e9   : > { %v510_v1 = vsel %vm495_vm3, %v493_v59, %v508_v0 }
 0x1ea   : > { %511 = vst [vmem:[%s245_s10] sm:$0xff] %v510_v1 }
 0x1eb   : > { %672 = shalt.err (!%p669_p3)
}
 0x1ec   : > { %s673_s18 = scalar_lea.hbm %s858_s13, 128  ;;  %s677_s26 = scalar_lea.hbm %s906_s6, 256 }
 0x1ed   : > { %p674_p4 = scmp.ne.s32.totalorder %s858_s13, %s673_s18  ;;  %p678_p9 = scmp.lt.u32.totalorder %s858_s13, %s906_s6 }
 0x1ee   : > { %p679_p10 = scmp.lt.u32.totalorder %s677_s26, %s673_s18  ;;  %p681_p12 = scmp.lt.u32.totalorder %s673_s18, %s858_s13 }
 0x1ef   : > { %p675_p7 = pnand %p674_p4, %p800_p5 }
 0x1f0   : > { %p680_p11 = por %p679_p10, %p678_p9 }
 0x1f1   : > { %p676_p8 = pneg %p675_p7 }
 0x1f2   : > { %p682_p13 = por %p681_p12, %p680_p11 }
 0x1f4   : > { %p683_p0 = pnand %p682_p13, %p676_p8 }
 0x1f6   : > { %686 = shalt.err (!%p683_p0)
}
 0x1f7   : > { %614 = dma.vmem_to_hbm [thread:$0]  (%p800_p5), %s860_s11, 128, %s858_s13, %s513_s14  }
 0x1f8 PF: > { %p620_p1 = scmp.ge.s32.totalorder %s721_s24, 2  ;;  %s539_s10 = sand.u32 1, %s709_s21  }
 0x1f9   : > { %s540_s9 = scalar_lea.sflag [#allocation3], %s539_s10 }
 0x1fa   : > { %p617_p2 = pnand %p620_p1, %p804_p6 }
 0x1fc   : > { %704 = dma.done.wait (!%p617_p2), %s540_s9, 128  }
 0x1fd   : > { %706 = vsyncadd (!%p617_p2), %s540_s9, 4294967168  ;;  %p16_p3 = scmp.ge.s32.totalorder %s787_s27, 4   ;;  %s909_s21 = smov %s713_s22 }
 0x1fe   : > { %s910_s22 = smov %s717_s23  ;;  %s911_s23 = smov %s798_s30 }
 0x1ff   : > { %s912_s24 = smov %s787_s27  ;;  %18 = sbr.rel (!%p16_p3) target bundleno = 3 (0x3), region = 79 }
 0x206   :  { %545 = vsyncpa [#allocation3], 1 }
 0x207   :  { %547 = vsyncpa [#allocation3 + $0x1], 1 }

</bundles_post_ra>
